<compile_context>
chip_gen: v5e
topology: v5e:2x2
jax: 0.10.0
libtpu: 0.0.40
codegen_flags: <defaults>
</compile_context>

<pallas_src>
import jax
import jax.numpy as jnp
from jax import lax
from jax.experimental import pallas as pl
from jax.experimental.pallas import tpu as pltpu

EPS = 1e-6      # module-level EPS in the PyTorch file
BN_EPS = 1e-5   # nn.BatchNorm1d default eps


def _vnt_bn_kernel(gamma_ref, beta_ref, x_ref, o_ref):
    """One channel block.

    gamma_ref / beta_ref: [CB, 1]    per-channel BN affine for this block.
    x_ref / o_ref:        [B, CB, 3N] dense tile; the lane axis holds the
                          three vector components back-to-back (N each).
    """
    B, CB, three_n = x_ref.shape
    n = three_n // 3
    f32 = jnp.float32

    # Contiguous per-component lane slices (each [B, CB, N]); together they
    # read the whole tile exactly once.
    x0 = x_ref[:, :, pl.ds(0 * n, n)].astype(f32)
    x1 = x_ref[:, :, pl.ds(1 * n, n)].astype(f32)
    x2 = x_ref[:, :, pl.ds(2 * n, n)].astype(f32)

    # mean over the sample axis (original dim=3), per (batch, channel, comp)
    m0 = jnp.mean(x0, axis=-1, keepdims=True)          # [B, CB, 1]
    m1 = jnp.mean(x1, axis=-1, keepdims=True)
    m2 = jnp.mean(x2, axis=-1, keepdims=True)

    c0 = x0 - m0
    c1 = x1 - m1
    c2 = x2 - m2

    # torch.norm(x, dim=2) + EPS  ->  L2 over the three components (pure VPU,
    # no padded-sublane reduction, no relayout).
    norm = jnp.sqrt(c0 * c0 + c1 * c1 + c2 * c2) + EPS  # [B, CB, N]

    # BatchNorm1d training-mode (biased) stats per channel over (B, N).
    # Two-pass variance: matches the reference numerics even when
    # mean(norm) >> std(norm).
    inv_cnt = f32(1.0 / (B * n))
    mu = jnp.sum(norm, axis=(0, 2), keepdims=True) * inv_cnt      # [1, CB, 1]
    d = norm - mu
    var = jnp.sum(d * d, axis=(0, 2), keepdims=True) * inv_cnt    # [1, CB, 1]

    # Fold the BN affine into per-channel scale/shift:
    #   out = xc / norm * norm_bn + mean = xc * (scale + shift / norm) + mean
    gamma = gamma_ref[...].astype(f32)[None, :, :]      # [1, CB, 1]
    beta = beta_ref[...].astype(f32)[None, :, :]
    scale = gamma * lax.rsqrt(var + BN_EPS)
    shift = beta - mu * scale

    # EUP approximate reciprocal + one Newton refinement (~f32 accurate),
    # keeps the divide off the VALU slot.
    r = pl.reciprocal(norm, approx=True)
    r = r * (2.0 - norm * r)
    ratio = scale + shift * r                            # [B, CB, N]

    # One multiply-add per component on the big data, stored back into the
    # dense lane layout.
    o_ref[:, :, pl.ds(0 * n, n)] = (c0 * ratio + m0).astype(o_ref.dtype)
    o_ref[:, :, pl.ds(1 * n, n)] = (c1 * ratio + m1).astype(o_ref.dtype)
    o_ref[:, :, pl.ds(2 * n, n)] = (c2 * ratio + m2).astype(o_ref.dtype)


def _vmem_capacity_bytes():
    try:
        return int(pltpu.get_tpu_info().vmem_capacity_bytes)
    except Exception:
        return 64 * 1024 * 1024   # conservative fallback (v7x per-TC VMEM)


def _choose_c_block(B, C, N, tile_budget_bytes):
    """Largest channel block (multiple of 8 and divisor of C, or C itself)
    whose dense f32 tile fits the budget; prefer >=4 grid steps (keeps both
    v7x TensorCores pipelining), then >=2, then the largest fitting block."""
    per_c = B * 3 * N * 4          # dense f32 bytes per channel (no padding)
    cands = sorted({d for d in range(8, C + 1, 8) if C % d == 0} | {C})
    fitting = [d for d in cands if d * per_c <= tile_budget_bytes] or [cands[0]]
    for min_steps in (4, 2, 1):
        ok = [d for d in fitting if C // d >= min_steps]
        if ok:
            return max(ok)
    return max(fitting)


def vnt_batch_norm(x, gamma, beta):
    """VNTBatchNorm(num_features=C, dim=4) forward (training-mode BN).

    x: [B, C, 3, N]; gamma, beta: [C] BatchNorm1d affine parameters.
    """
    B, C, V, N = x.shape
    assert V == 3, "expected a 3-vector feature axis at dim 2"

    vmem_cap = _vmem_capacity_bytes()
    # in-tile budget: 2x in + 2x out (double buffering) + ~3 tiles of
    # intermediates stays well under the requested vmem limit.
    tile_budget = vmem_cap // 10
    vmem_limit = (vmem_cap * 4) // 5

    c_blk = _choose_c_block(B, C, N, tile_budget)
    grid = (C // c_blk,)

    # Free, contiguous reshape: fold the 3-vector axis into the lane axis so
    # the block's minor dims are (c_blk, 3N) -- no 3->8 sublane padding tax.
    x_r = x.reshape(B, C, 3 * N)
    gamma2d = gamma.reshape(C, 1).astype(jnp.float32)
    beta2d = beta.reshape(C, 1).astype(jnp.float32)

    out_r = pl.pallas_call(
        _vnt_bn_kernel,
        out_shape=jax.ShapeDtypeStruct((B, C, 3 * N), x.dtype),
        grid=grid,
        in_specs=[
            pl.BlockSpec((c_blk, 1), lambda c: (c, 0)),            # gamma
            pl.BlockSpec((c_blk, 1), lambda c: (c, 0)),            # beta
            pl.BlockSpec((B, c_blk, 3 * N), lambda c: (0, c, 0)),  # x
        ],
        out_specs=pl.BlockSpec((B, c_blk, 3 * N), lambda c: (0, c, 0)),
        compiler_params=pltpu.CompilerParams(
            dimension_semantics=("parallel",),
            vmem_limit_bytes=int(vmem_limit),
        ),
    )(gamma2d, beta2d, x_r)

    return out_r.reshape(B, C, 3, N)


def vnt_batch_norm_ref(x, gamma, beta):
    """Pure-JAX reference mirroring the PyTorch forward (training-mode BN)."""
    mean_val = jnp.mean(x, axis=3, keepdims=True)                 # [B,C,3,1]
    xc = x - mean_val
    norm = jnp.sqrt(jnp.sum(xc * xc, axis=2)) + EPS               # [B,C,N]
    mu = jnp.mean(norm, axis=(0, 2), keepdims=True)
    var = jnp.mean((norm - mu) ** 2, axis=(0, 2), keepdims=True)
    norm_bn = (norm - mu) / jnp.sqrt(var + BN_EPS)
    norm_bn = norm_bn * gamma[None, :, None] + beta[None, :, None]
    return xc / norm[:, :, None, :] * norm_bn[:, :, None, :] + mean_val


if __name__ == "__main__":
    key = jax.random.PRNGKey(0)
    kx, kg, kb = jax.random.split(key, 3)

    B, C, N = 2, 16, 256
    x = jax.random.normal(kx, (B, C, 3, N), dtype=jnp.float32)
    # deterministic synthetic BN affine params (shape: [num_features] = [C])
    gamma = 1.0 + 0.1 * jax.random.normal(kg, (C,), dtype=jnp.float32)
    beta = 0.1 * jax.random.normal(kb, (C,), dtype=jnp.float32)

    out = jax.block_until_ready(vnt_batch_norm(x, gamma, beta))
    ref = vnt_batch_norm_ref(x, gamma, beta)

    assert out.shape == x.shape and out.dtype == x.dtype
    max_err = float(jnp.max(jnp.abs(out - ref)))
    assert jnp.allclose(out, ref, atol=2e-4, rtol=2e-4), max_err

    print("KERNEL_OK")
</pallas_src>

<mosaic_0001>
module attributes {stable_mosaic.version = 11 : i64} {
  func.func @_vnt_bn_kernel(%arg0: i32, %arg1: memref<8x1xf32, #tpu.memory_space<vmem>>, %arg2: memref<8x1xf32, #tpu.memory_space<vmem>>, %arg3: memref<2x8x768xf32, #tpu.memory_space<vmem>>, %arg4: memref<2x8x768xf32, #tpu.memory_space<vmem>>) attributes {dimension_semantics = [#tpu.dimension_semantics<parallel>], iteration_bounds = array<i64: 2>, scalar_prefetch = 0 : i64, scratch_operands = 0 : i64, tpu.core_type = #tpu.core_type<tc>, window_params = [{transform_indices = @transform_0, window_bounds = array<i64: 8, 1>}, {transform_indices = @transform_1, window_bounds = array<i64: 8, 1>}, {transform_indices = @transform_2, window_bounds = array<i64: 2, 8, 768>}, {transform_indices = @transform_3, window_bounds = array<i64: 2, 8, 768>}]} {
    %c0 = arith.constant 0 : index
    %c0_0 = arith.constant 0 : index
    %c0_1 = arith.constant 0 : index
    %0 = vector.load %arg3[%c0, %c0_0, %c0_1] : memref<2x8x768xf32, #tpu.memory_space<vmem>>, vector<2x8x256xf32>
    %c0_2 = arith.constant 0 : index
    %c0_3 = arith.constant 0 : index
    %c256 = arith.constant 256 : index
    %1 = vector.load %arg3[%c0_2, %c0_3, %c256] : memref<2x8x768xf32, #tpu.memory_space<vmem>>, vector<2x8x256xf32>
    %c0_4 = arith.constant 0 : index
    %c0_5 = arith.constant 0 : index
    %c512 = arith.constant 512 : index
    %2 = vector.load %arg3[%c0_4, %c0_5, %c512] : memref<2x8x768xf32, #tpu.memory_space<vmem>>, vector<2x8x256xf32>
    %cst = arith.constant dense<0.000000e+00> : vector<2x8xf32>
    %3 = vector.multi_reduction <add>, %0, %cst [2] : vector<2x8x256xf32> to vector<2x8xf32>
    %4 = vector.shape_cast %3 : vector<2x8xf32> to vector<2x8x1xf32>
    %cst_6 = arith.constant 2.560000e+02 : f32
    %5 = vector.broadcast %cst_6 : f32 to vector<2x8x1xf32>
    %6 = arith.divf %4, %5 : vector<2x8x1xf32>
    %cst_7 = arith.constant dense<0.000000e+00> : vector<2x8xf32>
    %7 = vector.multi_reduction <add>, %1, %cst_7 [2] : vector<2x8x256xf32> to vector<2x8xf32>
    %8 = vector.shape_cast %7 : vector<2x8xf32> to vector<2x8x1xf32>
    %cst_8 = arith.constant 2.560000e+02 : f32
    %9 = vector.broadcast %cst_8 : f32 to vector<2x8x1xf32>
    %10 = arith.divf %8, %9 : vector<2x8x1xf32>
    %cst_9 = arith.constant dense<0.000000e+00> : vector<2x8xf32>
    %11 = vector.multi_reduction <add>, %2, %cst_9 [2] : vector<2x8x256xf32> to vector<2x8xf32>
    %12 = vector.shape_cast %11 : vector<2x8xf32> to vector<2x8x1xf32>
    %cst_10 = arith.constant 2.560000e+02 : f32
    %13 = vector.broadcast %cst_10 : f32 to vector<2x8x1xf32>
    %14 = arith.divf %12, %13 : vector<2x8x1xf32>
    %15 = vector.broadcast %6 : vector<2x8x1xf32> to vector<2x8x256xf32>
    %16 = arith.subf %0, %15 : vector<2x8x256xf32>
    %17 = vector.broadcast %10 : vector<2x8x1xf32> to vector<2x8x256xf32>
    %18 = arith.subf %1, %17 : vector<2x8x256xf32>
    %19 = vector.broadcast %14 : vector<2x8x1xf32> to vector<2x8x256xf32>
    %20 = arith.subf %2, %19 : vector<2x8x256xf32>
    %21 = arith.mulf %16, %16 : vector<2x8x256xf32>
    %22 = arith.mulf %18, %18 : vector<2x8x256xf32>
    %23 = arith.addf %21, %22 : vector<2x8x256xf32>
    %24 = arith.mulf %20, %20 : vector<2x8x256xf32>
    %25 = arith.addf %23, %24 : vector<2x8x256xf32>
    %26 = math.sqrt %25 : vector<2x8x256xf32>
    %cst_11 = arith.constant 9.99999997E-7 : f32
    %27 = vector.broadcast %cst_11 : f32 to vector<2x8x256xf32>
    %28 = arith.addf %26, %27 : vector<2x8x256xf32>
    %cst_12 = arith.constant dense<0.000000e+00> : vector<8xf32>
    %29 = vector.multi_reduction <add>, %28, %cst_12 [0, 2] : vector<2x8x256xf32> to vector<8xf32>
    %30 = vector.shape_cast %29 : vector<8xf32> to vector<1x8x1xf32>
    %cst_13 = arith.constant 0.001953125 : f32
    %31 = vector.broadcast %cst_13 : f32 to vector<1x8x1xf32>
    %32 = arith.mulf %30, %31 : vector<1x8x1xf32>
    %33 = vector.broadcast %32 : vector<1x8x1xf32> to vector<2x8x256xf32>
    %34 = arith.subf %28, %33 : vector<2x8x256xf32>
    %35 = arith.mulf %34, %34 : vector<2x8x256xf32>
    %cst_14 = arith.constant dense<0.000000e+00> : vector<8xf32>
    %36 = vector.multi_reduction <add>, %35, %cst_14 [0, 2] : vector<2x8x256xf32> to vector<8xf32>
    %37 = vector.shape_cast %36 : vector<8xf32> to vector<1x8x1xf32>
    %cst_15 = arith.constant 0.001953125 : f32
    %38 = vector.broadcast %cst_15 : f32 to vector<1x8x1xf32>
    %39 = arith.mulf %37, %38 : vector<1x8x1xf32>
    %c0_16 = arith.constant 0 : index
    %c0_17 = arith.constant 0 : index
    %40 = vector.load %arg1[%c0_16, %c0_17] : memref<8x1xf32, #tpu.memory_space<vmem>>, vector<8x1xf32>
    %41 = vector.shape_cast %40 : vector<8x1xf32> to vector<1x8x1xf32>
    %c0_18 = arith.constant 0 : index
    %c0_19 = arith.constant 0 : index
    %42 = vector.load %arg2[%c0_18, %c0_19] : memref<8x1xf32, #tpu.memory_space<vmem>>, vector<8x1xf32>
    %43 = vector.shape_cast %42 : vector<8x1xf32> to vector<1x8x1xf32>
    %cst_20 = arith.constant 9.99999974E-6 : f32
    %44 = vector.broadcast %cst_20 : f32 to vector<1x8x1xf32>
    %45 = arith.addf %39, %44 : vector<1x8x1xf32>
    %46 = math.rsqrt %45 : vector<1x8x1xf32>
    %47 = arith.mulf %41, %46 : vector<1x8x1xf32>
    %48 = arith.mulf %32, %47 : vector<1x8x1xf32>
    %49 = arith.subf %43, %48 : vector<1x8x1xf32>
    %50 = tpu.reciprocal %28 {approx = true} : vector<2x8x256xf32> -> vector<2x8x256xf32>
    %51 = arith.mulf %28, %50 : vector<2x8x256xf32>
    %cst_21 = arith.constant 2.000000e+00 : f32
    %52 = vector.broadcast %cst_21 : f32 to vector<2x8x256xf32>
    %53 = arith.subf %52, %51 : vector<2x8x256xf32>
    %54 = arith.mulf %50, %53 : vector<2x8x256xf32>
    %55 = vector.broadcast %49 : vector<1x8x1xf32> to vector<2x8x256xf32>
    %56 = arith.mulf %55, %54 : vector<2x8x256xf32>
    %57 = vector.broadcast %47 : vector<1x8x1xf32> to vector<2x8x256xf32>
    %58 = arith.addf %57, %56 : vector<2x8x256xf32>
    %59 = arith.mulf %16, %58 : vector<2x8x256xf32>
    %60 = vector.broadcast %6 : vector<2x8x1xf32> to vector<2x8x256xf32>
    %61 = arith.addf %59, %60 : vector<2x8x256xf32>
    %c0_22 = arith.constant 0 : index
    %c0_23 = arith.constant 0 : index
    %c0_24 = arith.constant 0 : index
    %62 = vector.load %arg4[%c0_22, %c0_23, %c0_24] : memref<2x8x768xf32, #tpu.memory_space<vmem>>, vector<2x8x256xf32>
    tpu.vector_store %arg4[%c0_22, %c0_23, %c0_24], %61 {strides = array<i32>} : memref<2x8x768xf32, #tpu.memory_space<vmem>>, vector<2x8x256xf32>,
    %63 = arith.mulf %18, %58 : vector<2x8x256xf32>
    %64 = vector.broadcast %10 : vector<2x8x1xf32> to vector<2x8x256xf32>
    %65 = arith.addf %63, %64 : vector<2x8x256xf32>
    %c0_25 = arith.constant 0 : index
    %c0_26 = arith.constant 0 : index
    %c256_27 = arith.constant 256 : index
    %66 = vector.load %arg4[%c0_25, %c0_26, %c256_27] : memref<2x8x768xf32, #tpu.memory_space<vmem>>, vector<2x8x256xf32>
    tpu.vector_store %arg4[%c0_25, %c0_26, %c256_27], %65 {strides = array<i32>} : memref<2x8x768xf32, #tpu.memory_space<vmem>>, vector<2x8x256xf32>,
    %67 = arith.mulf %20, %58 : vector<2x8x256xf32>
    %68 = vector.broadcast %14 : vector<2x8x1xf32> to vector<2x8x256xf32>
    %69 = arith.addf %67, %68 : vector<2x8x256xf32>
    %c0_28 = arith.constant 0 : index
    %c0_29 = arith.constant 0 : index
    %c512_30 = arith.constant 512 : index
    %70 = vector.load %arg4[%c0_28, %c0_29, %c512_30] : memref<2x8x768xf32, #tpu.memory_space<vmem>>, vector<2x8x256xf32>
    tpu.vector_store %arg4[%c0_28, %c0_29, %c512_30], %69 {strides = array<i32>} : memref<2x8x768xf32, #tpu.memory_space<vmem>>, vector<2x8x256xf32>,
    return
  }
  func.func @transform_0(%arg0: i32) -> (i32, i32) {
    %c0_i32 = arith.constant 0 : i32
    %c0_i32_0 = arith.constant 0 : i32
    return %arg0, %c0_i32 : i32, i32
  }
  func.func @transform_1(%arg0: i32) -> (i32, i32) {
    %c0_i32 = arith.constant 0 : i32
    %c0_i32_0 = arith.constant 0 : i32
    return %arg0, %c0_i32 : i32, i32
  }
  func.func @transform_2(%arg0: i32) -> (i32, i32, i32) {
    %c0_i32 = arith.constant 0 : i32
    %c0_i32_0 = arith.constant 0 : i32
    %c0_i32_1 = arith.constant 0 : i32
    return %c0_i32, %arg0, %c0_i32_0 : i32, i32, i32
  }
  func.func @transform_3(%arg0: i32) -> (i32, i32, i32) {
    %c0_i32 = arith.constant 0 : i32
    %c0_i32_0 = arith.constant 0 : i32
    %c0_i32_1 = arith.constant 0 : i32
    return %c0_i32, %arg0, %c0_i32_0 : i32, i32, i32
  }
}

</mosaic_0001>

<bundles_post_ra>
// kernel: tpu_custom_call.1
= control target key start
LH: loop header
LB: loop body
LE: loop exit
PB: predicated region body
PF: predicated region fallthrough
CT: control target
= control target key end

     0   :  { %8 = vsyncpa [#allocation3], 0  ;;  %s1015_s0 = inlined_call_operand.vmem [shape: f32[16,1], index: 0, kind: input, shape index: {}]   ;;  %s1016_s1 = inlined_call_operand.vmem [shape: f32[16,1], index: 1, kind: input, shape index: {}]   ;;  %s1017_s2 = inlined_call_operand.hbm [shape: f32[2,16,768], index: 2, kind: input, shape index: {}]   ;;  %s1018_s3 = inlined_call_operand.hbm [shape: f32[2,16,768], index: 3, kind: output, shape index: {}]  }
   0x1   :  { %10 = vsyncpa [#allocation3 + $0x1], 0 }
   0x2   :  { %11 = vsyncpa [#allocation4], 0 }
   0x3   :  { %13 = vsyncpa [#allocation4 + $0x1], 0  ;;  %s787_s12 = smov 0   ;;  %s789_s13 = smov 0  }
   0x4   :  { %s791_s14 = smov 0   ;;  %s793_s15 = smov 0  }
   0x5 LB: > { %s808_s16 = sadd.s32 4294967295, %s757_s15   ;;  %s571_s17 = sadd.s32 4294967294, %s757_s15   ;;  %s757_s15 = sphi %s793_s15, %s1026_s15   ;;  %s753_s14 = sphi %s791_s14, %s1025_s14   ;;  %s749_s13 = sphi %s789_s13, %s1024_s13   ;;  %s745_s12 = sphi %s787_s12, %s1023_s12  }
   0x6   : > { %s812_s18 = sadd.s32 1, %s757_s15   ;;  %s78_s19 = sadd.s32 1, %s753_s14 }
   0x7   : > { %s75_s20 = ssub.s32 %s757_s15, %s812_s18  ;;  %p85_p0 = scmp.ne.s32.totalorder %s753_s14, %s749_s13 }
   0x8   : > { %p76_p1 = scmp.eq.s32.totalorder %s75_s20, 0  ;;  %p86_p2 = scmp.eq.s32.totalorder %s757_s15, 0 }
   0x9   : > { %p91_p3 = scmp.ne.s32.totalorder %s749_s13, %s745_s12  ;;  %p92_p4 = scmp.eq.s32.totalorder %s808_s16, 0 }
   0xa   : > { %s824_s21 = scalar_select %p76_p1, %s753_s14, %s78_s19  }
   0xb   : > { %p87_p5 = por %p86_p2, %p85_p0  ;;  %p826_p6 = por %p92_p4, %p91_p3 }
   0xc   : > { %p115_p7 = scmp.eq.s32.totalorder %s808_s16, 1  ;;  %p121_p8 = scmp.eq.s32.totalorder %s571_s17, 1 }
   0xd   : > { %p573_p9 = scmp.ge.s32.totalorder %s757_s15, 2  ;;  %p597_p10 = scmp.lt.s32.totalorder %s757_s15, 2 }
   0xe   : > { %p833_p11 = por %p115_p7, %p85_p0  ;;  %p837_p12 = por %p121_p8, %p91_p3 }
   0xf   : > { %s155_s25 = sand.u32 1, %s753_s14   ;;  %s582_s26 = smul.u32 48, %s757_s15 }
  0x10   : > { %s581_s27 = smul.u32 96, %s155_s25  ;;  %p846_p13 = pnand %p597_p10, %p87_p5 }
  0x11   : > { %s164_s30 = scalar_lea.hbm %s1017_s2, %s582_s26  ;;  %p575_p0 = scmp.ge.s32.totalorder %s757_s15, 1 }
  0x12   : > { %s165_s5 = sshll.u32 %s164_s30, 4  ;;  %s159_s6 = scalar_lea.vmem [#allocation2], %s581_s27  ;;  %s166_s5 = int_to_ptr.hbm [resolvable:$true] %s165_s5 }
  0x13   : > { %s167_s7 = sshll.u32 %s159_s6, 4  ;;  %s156_s8 = scalar_lea.sflag [#allocation3], %s155_s25  ;;  %s168_s7 = int_to_ptr.vmem [resolvable:$true] %s167_s7 }
  0x14   : > { %s661_s9 = sshra.s32 %s166_s5, 4  ;;  %p665_p2 = pneg %p846_p13  ;;  %s662_s9 = int_to_ptr.hbm [resolvable:$true] %s661_s9 }
  0x15   : > { %s663_s10 = scalar_lea.hbm %s662_s9, 96  ;;  %s668_s19 = scalar_lea.hbm %s1017_s2, 192 }
  0x16   : > { %p664_p1 = scmp.ne.s32.totalorder %s662_s9, %s663_s10  ;;  %p669_p5 = scmp.lt.s32.totalorder %s662_s9, %s1017_s2 }
  0x17   : > { %p670_p7 = scmp.lt.s32.totalorder %s668_s19, %s663_s10 }
  0x18   : > { %p666_p3 = pnand %p665_p2, %p664_p1 }
  0x19   : > { %p671_p8 = por %p670_p7, %p669_p5 }
  0x1a   : > { %p667_p4 = pneg %p666_p3 }
  0x1c   : > { %p672_p10 = pnand %p671_p8, %p667_p4 }
  0x1e   : > { %675 = shalt.err (!%p672_p10)
}
  0x1f   : > { %s759_s25 = smov 1536   ;;  %s760_s27 = smov 768  }
  0x20   : > { %s761_s28 = smov 48   ;;  %p175_p1 = scmp.lt.s32.totalorder %s757_s15, 3 }
  0x21   : > { %592 = dma.hbm_to_vmem [thread:$0]  (!%p846_p13), %s166_s5, 1536, %s168_s7, %s156_s8, %s759_s25, %s760_s27, %s761_s28  }
  0x22   : > { %p176_p2 = pnand %p575_p0, %p175_p1 }
  0x23   : > { %s865_s29 = sand.u32 (!%p176_p2), 1, %s749_s13  }
  0x24   : > { %179 = sbr.rel (%p176_p2) target bundleno = 615 (0x267), region = 32  ;;  %s182_s6 = scalar_lea.sflag (!%p176_p2), [#allocation3], %s865_s29 }
  0x25   : > { %s583_s30 = smul.u32 (!%p176_p2), 96, %s865_s29 }
  0x27   : > { %s185_s9 = scalar_lea.vmem (!%p176_p2), [#allocation2], %s583_s30 }
  0x29   : > { %736 = dma.done.wait (%p826_p6), %s182_s6, 1536  }
  0x2a   : > { %738 = vsyncadd (%p826_p6), %s182_s6, 4294965760  ;;  %v227_v0 = vld [vmem:[%s185_s9 + $0x30] sm:$0xff]  ;;  %v228_v1 = vld [vmem:[%s185_s9 + $0x38] sm:$0xff]  ;;  %v762_v18 = vmov 256.0   ;;  %p217_p6 = scmp.lt.s32.totalorder %s808_s16, 1  ;;  %s584_s19 = smul.u32 48, %s808_s16 }
  0x2b   : > { %v225_v2 = vld [vmem:[%s185_s9] sm:$0xff]  ;;  %v240_v3 = vadd.f32 %v228_v1, %v227_v0  ;;  %v226_v4 = vld [vmem:[%s185_s9 + $0x8] sm:$0xff]  ;;  %v229_v11 = vld [vmem:[%s185_s9 + $0x10] sm:$0xff]  ;;  %641 = vrcp.f32 %v762_v18  ;;  %s216_s20 = scalar_lea.vmem [#allocation5], %s583_s30  ;;  %s459_s30 = scalar_lea.sflag [#allocation4], %s865_s29 }
  0x2c   : > { %v233_v5 = vld [vmem:[%s185_s9 + $0x20] sm:$0xff]  ;;  %v234_v6 = vld [vmem:[%s185_s9 + $0x28] sm:$0xff]  ;;  %v237_v7 = vadd.f32 %v226_v4, %v225_v2  ;;  %v230_v12 = vld [vmem:[%s185_s9 + $0x18] sm:$0xff]  ;;  %s218_s22 = scalar_select %p217_p6, %s808_s16, 1 }
  0x2d   : > { %v260_v8 = vadd.f32 %v234_v6, %v233_v5  ;;  %241 = vadd.xlane.f32.xlu1 %v240_v3  ;;  %v231_v9 = vld [vmem:[%s185_s9 + $0x40] sm:$0xff]  ;;  %v232_v10 = vld [vmem:[%s185_s9 + $0x48] sm:$0xff]  ;;  %v235_v13 = vld [vmem:[%s185_s9 + $0x50] sm:$0xff]  ;;  %v252_v16 = vadd.f32 %v230_v12, %v229_v11  ;;  %s470_s25 = scalar_lea.hbm %s1018_s3, %s584_s19  ;;  %s471_s27 = sshll.u32 %s216_s20, 4  ;;  %s472_s27 = int_to_ptr.vmem [resolvable:$true] %s471_s27 }
  0x2e   : > { %238 = vadd.xlane.f32.xlu0 %v237_v7  ;;  %v236_v14 = vld [vmem:[%s185_s9 + $0x58] sm:$0xff]  ;;  %v255_v15 = vadd.f32 %v232_v10, %v231_v9  ;;  %s576_s4 = sshll.u32 %s218_s22, 3  ;;  %s473_s28 = sshll.u32 %s470_s25, 4  ;;  %s474_s28 = int_to_ptr.hbm [resolvable:$true] %s473_s28 }
  0x2f   : > { %261 = vadd.xlane.f32.xlu2 %v260_v8  ;;  %v263_v17 = vadd.f32 %v236_v14, %v235_v13  ;;  %s220_s8 = scalar_lea.vmem %s1015_s0, %s576_s4  ;;  %s224_s17 = scalar_lea.vmem %s1016_s1, %s576_s4 }
  0x30   : > { %s705_s6 = sshra.s32 %s474_s28, 4  ;;  %s711_s5 = scalar_lea.hbm %s1018_s3, 192  ;;  %s706_s6 = int_to_ptr.hbm [resolvable:$true] %s705_s6 }
  0x31   : > { %v642_v19 = vpop.eup %641  ;;  %s707_s9 = scalar_lea.hbm %s706_s6, 96  ;;  %p712_p4 = scmp.lt.s32.totalorder %s706_s6, %s1018_s3 }
  0x32   : > { %v244_v20 = vmul.f32 256.0, %v642_v19  ;;  %vm248_vm0 = vweird.f32 %v642_v19  ;;  %p708_p13 = scmp.ne.s32.totalorder %s706_s6, %s707_s9  ;;  %p713_p5 = scmp.lt.s32.totalorder %s711_s5, %s707_s9 }
  0x34   : > { %v245_v21 = vsub.f32 1.0, %v244_v20  ;;  %p709_p0 = pnand %p708_p13, %p833_p11  ;;  %p714_p7 = por %p713_p5, %p712_p4 }
  0x35   : > { %256 = vadd.xlane.f32.xlu1 %v255_v15 }
  0x36   : > { %253 = vadd.xlane.f32.xlu0 %v252_v16  ;;  %v246_v22 = vmul.f32 %v642_v19, %v245_v21  ;;  %p710_p3 = pneg %p709_p0 }
  0x37   : > { %264 = vadd.xlane.f32.xlu2 %v263_v17 }
  0x38   : > { %v247_v23 = vadd.f32 %v642_v19, %v246_v22  ;;  %p715_p8 = pnand %p714_p7, %p710_p3 }
  0x3a   : > { %v249_v27 = vsel %vm248_vm0, %v642_v19, %v247_v23 }
  0xa0   : > { %v242_v24 = vpop.xlane.xlu1 %241 }
  0xa1   : > { %v239_v25 = vpop.xlane.xlu0 %238  ;;  %v875_v28 = vmul.f32 %v249_v27, %v242_v24 }
  0xa2   : > { %v262_v26 = vpop.xlane.xlu2 %261  ;;  %v877_v29 = vmul.f32 %v249_v27, %v239_v25 }
  0xa3   : > { %v879_v30 = vmul.f32 %v262_v26, %v249_v27  ;;  %v882_v31 = vsub.f32 %v227_v0, %v875_v28  ;;  %v885_v32 = vsub.f32 %v228_v1, %v875_v28 }
  0xa4   : > { %v888_v34 = vsub.f32 %v225_v2, %v877_v29  ;;  %v891_v35 = vsub.f32 %v226_v4, %v877_v29 }
  0xa5   : > { %v896_v39 = vsub.f32 %v233_v5, %v879_v30  ;;  %v899_v40 = vsub.f32 %v234_v6, %v879_v30  ;;  %v282_v43 = vmul.f32 %v882_v31, %v882_v31  ;;  %v283_v44 = vmul.f32 %v885_v32, %v885_v32 }
  0xa6   : > { %v280_v51 = vmul.f32 %v888_v34, %v888_v34  ;;  %v281_v52 = vmul.f32 %v891_v35, %v891_v35 }
  0xa7   : > { %v292_v61 = vmul.f32 %v896_v39, %v896_v39  ;;  %v293_v62 = vmul.f32 %v899_v40, %v899_v40 }
  0xa8   : > { %v257_v33 = vpop.xlane.xlu1 %256 }
  0xa9   : > { %v893_v36 = vmul.f32 %v257_v33, %v249_v27  ;;  %v254_v37 = vpop.xlane.xlu0 %253 }
  0xaa   : > { %v265_v38 = vpop.xlane.xlu2 %264  ;;  %v901_v41 = vmul.f32 %v254_v37, %v249_v27 }
  0xab   : > { %v903_v42 = vmul.f32 %v265_v38, %v249_v27  ;;  %v910_v45 = vsub.f32 %v231_v9, %v893_v36  ;;  %v913_v46 = vsub.f32 %v232_v10, %v893_v36 }
  0xac   : > { %v916_v47 = vsub.f32 %v229_v11, %v901_v41  ;;  %v919_v48 = vsub.f32 %v230_v12, %v901_v41 }
  0xad   : > { %v922_v49 = vsub.f32 %v235_v13, %v903_v42  ;;  %v925_v50 = vsub.f32 %v236_v14, %v903_v42  ;;  %v286_v53 = vmul.f32 %v910_v45, %v910_v45  ;;  %v287_v54 = vmul.f32 %v913_v46, %v913_v46 }
  0xae   : > { %v284_v55 = vmul.f32 %v916_v47, %v916_v47  ;;  %v285_v56 = vmul.f32 %v919_v48, %v919_v48 }
  0xaf   : > { %v294_v57 = vmul.f32 %v922_v49, %v922_v49  ;;  %v295_v58 = vmul.f32 %v925_v50, %v925_v50  ;;  %v290_v59 = vadd.f32 %v286_v53, %v282_v43  ;;  %v291_v60 = vadd.f32 %v287_v54, %v283_v44 }
  0xb0   : > { %v288_v63 = vadd.f32 %v284_v55, %v280_v51  ;;  %v289_v0 = vadd.f32 %v285_v56, %v281_v52 }
  0xb1   : > { %v298_v1 = vadd.f32 %v294_v57, %v290_v59  ;;  %v299_v4 = vadd.f32 %v295_v58, %v291_v60 }
  0xb2   : > { %v296_v2 = vadd.f32 %v292_v61, %v288_v63  ;;  %v297_v3 = vadd.f32 %v293_v62, %v289_v0 }
  0xb3   : > { %643 = vrsqrt.f32 %v298_v1  ;;  %vm331_vm1 = vcmp.eq.f32.partialorder %v298_v1, inf  ;;  %vm333_vm2 = vcmp.eq.f32.partialorder %v298_v1, 0.0  ;;  %v334_v37 = vand.u32 2147483648, %v298_v1 }
  0xb4   : > { %645 = vrsqrt.f32 %v296_v2  ;;  %vm307_vm3 = vcmp.eq.f32.partialorder %v296_v2, inf  ;;  %vm309_vm4 = vcmp.eq.f32.partialorder %v296_v2, 0.0  ;;  %v310_v44 = vand.u32 2147483648, %v296_v2 }
  0xb5   : > { %647 = vrsqrt.f32 %v297_v3  ;;  %vm319_vm5 = vcmp.eq.f32.partialorder %v297_v3, inf  ;;  %vm321_vm6 = vcmp.eq.f32.partialorder %v297_v3, 0.0  ;;  %v322_v54 = vand.u32 2147483648, %v297_v3 }
  0xb6   : > { %649 = vrsqrt.f32 %v299_v4  ;;  %vm343_vm7 = vcmp.eq.f32.partialorder %v299_v4, inf  ;;  %v346_v58 = vand.u32 2147483648, %v299_v4  ;;  %vm345_vm8 = vcmp.eq.f32.partialorder %v299_v4, 0.0 }
  0xb9   : > { %v644_v5 = vpop.eup %643 }
  0xba   : > { %v646_v6 = vpop.eup %645  ;;  %v325_v7 = vmul.f32 %v644_v5, %v298_v1 }
  0xbb   : > { %v648_v8 = vpop.eup %647  ;;  %v301_v9 = vmul.f32 %v646_v6, %v296_v2 }
  0xbc   : > { %v650_v10 = vpop.eup %649  ;;  %v313_v11 = vmul.f32 %v648_v8, %v297_v3  ;;  %v326_v12 = vmul.f32 %v644_v5, %v325_v7 }
  0xbd   : > { %v302_v13 = vmul.f32 %v646_v6, %v301_v9  ;;  %v337_v14 = vmul.f32 %v650_v10, %v299_v4 }
  0xbe   : > { %v314_v15 = vmul.f32 %v648_v8, %v313_v11  ;;  %v327_v16 = vmul.f32 0.5, %v326_v12 }
  0xbf   : > { %v303_v17 = vmul.f32 0.5, %v302_v13  ;;  %v338_v18 = vmul.f32 %v650_v10, %v337_v14 }
  0xc0   : > { %v315_v19 = vmul.f32 0.5, %v314_v15  ;;  %v328_v20 = vsub.f32 1.5, %v327_v16 }
  0xc1   : > { %v304_v21 = vsub.f32 1.5, %v303_v17  ;;  %v339_v22 = vmul.f32 0.5, %v338_v18 }
  0xc2   : > { %v316_v23 = vsub.f32 1.5, %v315_v19  ;;  %v329_v24 = vmul.f32 %v644_v5, %v328_v20  ;;  %v763_v19 = vmov 0  }
  0xc3   : > { %v305_v25 = vmul.f32 %v646_v6, %v304_v21  ;;  %v340_v26 = vsub.f32 1.5, %v339_v22  ;;  %640 = vset.pattern.permute.xlu0 %v763_v19  ;;  %639 = vset.pattern.permute.xlu2 %v763_v19 }
  0xc4   : > { %v317_v27 = vmul.f32 %v648_v8, %v316_v23  ;;  %v330_v33 = vmul.f32 %v329_v24, %v298_v1 }
  0xc5   : > { %v306_v38 = vmul.f32 %v305_v25, %v296_v2  ;;  %v341_v43 = vmul.f32 %v650_v10, %v340_v26 }
  0xc6   : > { %v318_v51 = vmul.f32 %v317_v27, %v297_v3  ;;  %v332_v52 = vsel %vm331_vm1, %v298_v1, %v330_v33  ;;  %v372_v33 = vld [vmem:[%s220_s8] sm:$0xff] }
  0xc7   : > { %v308_v53 = vsel %vm307_vm3, %v296_v2, %v306_v38  ;;  %v342_v55 = vmul.f32 %v341_v43, %v299_v4  ;;  %v335_v60 = vsel %vm333_vm2, %v334_v37, %v332_v52 }
  0xc8   : > { %v311_v56 = vsel %vm309_vm4, %v310_v44, %v308_v53  ;;  %v320_v57 = vsel %vm319_vm5, %v297_v3, %v318_v51  ;;  %v350_v5 = vadd.f32 1e-06, %v335_v60  ;;  %v373_v44 = vld [vmem:[%s224_s17] sm:$0xff] }
  0xc9   : > { %v323_v59 = vsel %vm321_vm6, %v322_v54, %v320_v57  ;;  %v344_v61 = vsel %vm343_vm7, %v299_v4, %v342_v55  ;;  %v348_v62 = vadd.f32 1e-06, %v311_v56 }
  0xca   : > { %v349_v63 = vadd.f32 1e-06, %v323_v59  ;;  %v347_v0 = vsel %vm345_vm8, %v346_v58, %v344_v61 }
  0xcb   : > { %v351_v7 = vadd.f32 1e-06, %v347_v0 }
  0xcc   : > { %v352_v6 = vadd.f32 %v349_v63, %v348_v62 }
  0xce   : > { %v353_v8 = vadd.f32 %v352_v6, %v350_v5 }
  0xd0   : > { %v354_v2 = vadd.f32 %v353_v8, %v351_v7 }
  0xd2   : > { %355 = vadd.xlane.f32.xlu0 %v354_v2 }
 0x145   : > { %v356_v9 = vpop.xlane.xlu0 %355 }
 0x146   : > { %v357_v10 = vmul.f32 0.001953125, %v356_v9 }
 0x148   : > { %v358_v11 = vsub.f32 %v348_v62, %v357_v10  ;;  %v359_v3 = vsub.f32 %v349_v63, %v357_v10  ;;  %v360_v12 = vsub.f32 %v350_v5, %v357_v10  ;;  %v361_v13 = vsub.f32 %v351_v7, %v357_v10 }
 0x14a   : > { %v362_v1 = vmul.f32 %v358_v11, %v358_v11  ;;  %v363_v14 = vmul.f32 %v359_v3, %v359_v3  ;;  %v364_v15 = vmul.f32 %v360_v12, %v360_v12  ;;  %v365_v16 = vmul.f32 %v361_v13, %v361_v13 }
 0x14c   : > { %v366_v4 = vadd.f32 %v363_v14, %v362_v1 }
 0x14e   : > { %v367_v17 = vadd.f32 %v366_v4, %v364_v15 }
 0x150   : > { %v368_v18 = vadd.f32 %v367_v17, %v365_v16 }
 0x152   : > { %369 = vadd.xlane.f32.xlu1 %v368_v18 }
 0x1c5   : > { %v370_v20 = vpop.xlane.xlu1 %369 }
 0x1c6   : > { %v371_v21 = vmul.f32 0.001953125, %v370_v20 }
 0x1c8   : > { %v374_v22 = vadd.f32 1e-05, %v371_v21 }
 0x1ca   : > { %651 = vrsqrt.f32 %v374_v22  ;;  %vm381_vm10 = vweird.f32 %v374_v22 }
 0x1cb   : > { %653 = vrcp.f32 %v350_v5 }
 0x1cc   : > { %655 = vrcp.f32 %v348_v62 }
 0x1cd   : > { %657 = vrcp.f32 %v349_v63 }
 0x1ce   : > { %659 = vrcp.f32 %v351_v7 }
 0x1d0   : > { %v652_v23 = vpop.eup %651 }
 0x1d1   : > { %v376_v24 = vmul.f32 %v652_v23, %v374_v22  ;;  %vm382_vm9 = vweird.f32 %v652_v23  ;;  %v654_v53 = vpop.eup %653 }
 0x1d2   : > { %vm383_vm11 = vmor %vm381_vm10, %vm382_vm9  ;;  %v656_v54 = vpop.eup %655  ;;  %v394_v59 = vmul.f32 %v654_v53, %v350_v5 }
 0x1d3   : > { %v377_v25 = vmul.f32 %v652_v23, %v376_v24  ;;  %v658_v55 = vpop.eup %657  ;;  %v392_v57 = vmul.f32 %v656_v54, %v348_v62 }
 0x1d4   : > { %v660_v56 = vpop.eup %659  ;;  %v393_v58 = vmul.f32 %v658_v55, %v349_v63  ;;  %v398_v6 = vsub.f32 2.0, %v394_v59 }
 0x1d5   : > { %v378_v26 = vmul.f32 0.5, %v377_v25  ;;  %v395_v60 = vmul.f32 %v660_v56, %v351_v7  ;;  %v396_v61 = vsub.f32 2.0, %v392_v57 }
 0x1d6   : > { %v397_v0 = vsub.f32 2.0, %v393_v58  ;;  %v402_v11 = vmul.f32 %v654_v53, %v398_v6 }
 0x1d7   : > { %v379_v27 = vsub.f32 1.5, %v378_v26  ;;  %v399_v8 = vsub.f32 2.0, %v395_v60  ;;  %v400_v9 = vmul.f32 %v656_v54, %v396_v61 }
 0x1d9   : > { %v380_v37 = vmul.f32 %v652_v23, %v379_v27  ;;  %v403_v3 = vmul.f32 %v660_v56, %v399_v8 }
 0x1db   : > { %v384_v38 = vsel %vm383_vm11, %v652_v23, %v380_v37 }
 0x1dc   : > { %v385_v43 = vmul.f32 %v384_v38, %v372_v33 }
 0x1de   : > { %415 = vperm.xlu0 %640, %v385_v43   ;;  %v386_v51 = vmul.f32 %v385_v43, %v357_v10  ;;  %v401_v10 = vmul.f32 %v658_v55, %v397_v0 }
 0x1e0   : > { %v387_v52 = vsub.f32 %v373_v44, %v386_v51 }
 0x1e2   : > { %406 = vperm.xlu2 %639, %v387_v52  }
 0x23c   : > { %v407_v2 = vpop.permute.xlu2 %406 }
 0x23d   : > { %v409_v12 = vmul.f32 %v407_v2, %v400_v9  ;;  %v410_v13 = vmul.f32 %v407_v2, %v401_v10  ;;  %v411_v1 = vmul.f32 %v407_v2, %v402_v11  ;;  %v412_v14 = vmul.f32 %v407_v2, %v403_v3 }
 0x250   : > { %v416_v15 = vpop.permute.xlu0 %415 }
 0x251   : > { %v418_v4 = vadd.f32 %v416_v15, %v409_v12  ;;  %v419_v62 = vadd.f32 %v416_v15, %v410_v13  ;;  %v420_v63 = vadd.f32 %v416_v15, %v411_v1  ;;  %v421_v5 = vadd.f32 %v416_v15, %v412_v14 }
 0x253   : > { %v422_v7 = vmul.f32 %v418_v4, %v888_v34  ;;  %v423_v16 = vmul.f32 %v419_v62, %v891_v35  ;;  %v424_v17 = vmul.f32 %v420_v63, %v882_v31  ;;  %v425_v18 = vmul.f32 %v421_v5, %v885_v32 }
 0x254   : > { %v434_v19 = vmul.f32 %v418_v4, %v916_v47  ;;  %v435_v20 = vmul.f32 %v419_v62, %v919_v48  ;;  %v436_v24 = vmul.f32 %v420_v63, %v910_v45  ;;  %v437_v35 = vmul.f32 %v421_v5, %v913_v46 }
 0x255   : > { %v426_v21 = vadd.f32 %v422_v7, %v877_v29  ;;  %v427_v22 = vadd.f32 %v423_v16, %v877_v29  ;;  %v428_v23 = vadd.f32 %v424_v17, %v875_v28  ;;  %v429_v34 = vadd.f32 %v425_v18, %v875_v28 }
 0x256   : > { %v438_v31 = vadd.f32 %v434_v19, %v901_v41  ;;  %v446_v32 = vmul.f32 %v418_v4, %v896_v39  ;;  %v439_v47 = vadd.f32 %v435_v20, %v901_v41  ;;  %v447_v29 = vmul.f32 %v419_v62, %v899_v40 }
 0x257   : > { %430 = vst [vmem:[%s216_s20] sm:$0xff] %v426_v21  ;;  %v440_v45 = vadd.f32 %v436_v24, %v893_v36  ;;  %v448_v48 = vmul.f32 %v420_v63, %v922_v49  ;;  %v441_v28 = vadd.f32 %v437_v35, %v893_v36  ;;  %v449_v46 = vmul.f32 %v421_v5, %v925_v50 }
 0x258   : > { %431 = vst [vmem:[%s216_s20 + $0x8] sm:$0xff] %v427_v22  ;;  %v450_v39 = vadd.f32 %v446_v32, %v879_v30  ;;  %v451_v40 = vadd.f32 %v447_v29, %v879_v30 }
 0x259   : > { %432 = vst [vmem:[%s216_s20 + $0x30] sm:$0xff] %v428_v23  ;;  %v452_v41 = vadd.f32 %v448_v48, %v903_v42  ;;  %v453_v49 = vadd.f32 %v449_v46, %v903_v42 }
 0x25a   : > { %433 = vst [vmem:[%s216_s20 + $0x38] sm:$0xff] %v429_v34 }
 0x25b   : > { %442 = vst [vmem:[%s216_s20 + $0x10] sm:$0xff] %v438_v31 }
 0x25c   : > { %443 = vst [vmem:[%s216_s20 + $0x18] sm:$0xff] %v439_v47 }
 0x25d   : > { %444 = vst [vmem:[%s216_s20 + $0x40] sm:$0xff] %v440_v45 }
 0x25e   : > { %445 = vst [vmem:[%s216_s20 + $0x48] sm:$0xff] %v441_v28 }
 0x25f   : > { %454 = vst [vmem:[%s216_s20 + $0x20] sm:$0xff] %v450_v39 }
 0x260   : > { %455 = vst [vmem:[%s216_s20 + $0x28] sm:$0xff] %v451_v40 }
 0x261   : > { %456 = vst [vmem:[%s216_s20 + $0x50] sm:$0xff] %v452_v41 }
 0x262   : > { %457 = vst [vmem:[%s216_s20 + $0x58] sm:$0xff] %v453_v49 }
 0x263   : > { %718 = shalt.err (!%p715_p8)
}
 0x264   : > { %s764_s29 = smov 768   ;;  %s765_s10 = smov 1536  }
 0x265   : > { %s766_s11 = smov 48  }
 0x266   : > { %587 = dma.vmem_to_hbm [thread:$0]  (%p833_p11), %s472_s27, 1536, %s474_s28, %s459_s30, %s764_s29, %s765_s10, %s766_s11  }
 0x267 PF: > { %s488_s17 = sand.u32 1, %s745_s12   ;;  %p594_p10 = pnand %p573_p9, %p837_p12 }
 0x268   : > { %s489_s19 = scalar_lea.sflag [#allocation4], %s488_s17 }
 0x269   : > { %p595_p1 = pneg %p594_p10 }
 0x26b   : > { %740 = dma.done.wait (%p595_p1), %s489_s19, 1536  }
 0x26c   : > { %742 = vsyncadd (%p595_p1), %s489_s19, 4294965760  ;;  %p16_p2 = scmp.ge.s32.totalorder %s812_s18, 4   ;;  %s1023_s12 = smov %s749_s13 }
 0x26d   : > { %s1024_s13 = smov %s753_s14  ;;  %s1025_s14 = smov %s824_s21 }
 0x26e   : > { %s1026_s15 = smov %s812_s18  ;;  %18 = sbr.rel (!%p16_p2) target bundleno = 5 (0x5), region = 83 }
 0x273   :  { %495 = vsyncpa [#allocation3], 1 }
 0x274   :  { %497 = vsyncpa [#allocation3 + $0x1], 1 }
 0x275   :  { %498 = vsyncpa [#allocation4], 1 }
 0x276   :  { %500 = vsyncpa [#allocation4 + $0x1], 1 }

</bundles_post_ra>
